<compile_context>
chip_gen: v7x
topology: tpu7x:2x2x1
jax: 0.10.0
libtpu: 0.0.40
codegen_flags: <defaults>
</compile_context>

<pallas_src>
import functools

import jax
import jax.numpy as jnp
from jax.experimental import pallas as pl
from jax.experimental.pallas import tpu as pltpu


def _cdiv(a, b):
    return (a + b - 1) // b


def _round_up(a, b):
    return _cdiv(a, b) * b


def _vq_frame_kernel(x_ref, wenc_ref, benc_ref, et_ref, esq_ref, ecat_ref,
                     bdec_ref, out_ref, stats_ref, *, tile_n, n_valid, d_pad,
                     k_pad):
    # ---- encoder linear (eval-mode BatchNorm already folded into W/b) ----
    x = x_ref[...]                                                      # (TN, M)
    h = (jnp.dot(x, wenc_ref[...], preferred_element_type=jnp.float32)
         + benc_ref[...])                                               # (TN, Dp)

    # ---- vector quantization: nearest codebook entry (padded K lanes have
    #      |E|^2 = 1e30 and zero E columns, so they can never win) ----
    h_sq = jnp.sum(h * h, axis=1, keepdims=True)                        # (TN, 1)
    d = h_sq + esq_ref[...] - 2.0 * jnp.dot(
        h, et_ref[...], preferred_element_type=jnp.float32)             # (TN, Kp)

    # argmin with first-index tie-break (matches torch.argmin), via min + iota
    min_d = jnp.min(d, axis=1, keepdims=True)
    lane_k = jax.lax.broadcasted_iota(jnp.int32, d.shape, 1)
    idx = jnp.min(jnp.where(d <= min_d, lane_k, k_pad), axis=1, keepdims=True)
    enc = (lane_k == idx).astype(jnp.float32)                           # (TN, Kp)

    # single fused one-hot contraction: enc @ [E | E @ Wdec^T]
    qd = jnp.dot(enc, ecat_ref[...], preferred_element_type=jnp.float32)
    q = qd[:, :d_pad]                                                   # (TN, Dp)
    # straight-through value == q; lane-dense decoder output slab
    out_ref[...] = qd[:, d_pad:] + bdec_ref[...]                        # (TN, Mp)

    # ---- partial stats (mask rows past the real batch for ragged tails) ----
    base = pl.program_id(0) * tile_n
    rows_k = base + jax.lax.broadcasted_iota(jnp.int32, enc.shape, 0)
    rows_d = base + jax.lax.broadcasted_iota(jnp.int32, h.shape, 0)
    enc_v = jnp.where(rows_k < n_valid, enc, 0.0)
    diff = jnp.where(rows_d < n_valid, q - h, 0.0)

    cnt = jnp.sum(enc_v, axis=0, keepdims=True)                         # (1, Kp)
    sse = jnp.sum(diff * diff)                                          # scalar
    srow = jax.lax.broadcasted_iota(jnp.int32, (2, k_pad), 0)
    slane = jax.lax.broadcasted_iota(jnp.int32, (2, k_pad), 1)
    stats = jnp.where(srow == 0,
                      jnp.broadcast_to(cnt, (2, k_pad)),
                      jnp.where(slane == 0, sse, 0.0))
    stats_ref[...] = stats[None]                                        # (1, 2, Kp)


def vq_frame_forward(x, params, *, tile_n=None, commitment_cost=0.25,
                     bn_eps=1e-5):
    """x: (B, motion_dim, 1) float32. Returns (y (B, motion_dim, 1), loss, perplexity)."""
    x2d = jnp.squeeze(x, axis=2)                                        # (B, M)
    n, motion_dim = x2d.shape
    latent_dim = params["wenc_t"].shape[1]
    k = params["emb"].shape[0]

    m_pad = _round_up(motion_dim, 128)
    d_pad = _round_up(latent_dim, 128)
    k_pad = _round_up(k, 128)

    # --- one-time host-side precompute (tiny) -------------------------------
    #  * fold eval-mode BatchNorm into the encoder weights/bias
    #  * |E|^2 row norms (padded lanes -> 1e30 so padded codes never win)
    #  * E_cat = [E | E @ Wdec^T] so quantize + decode is ONE one-hot matmul
    scale = params["gamma"] * jax.lax.rsqrt(params["running_var"] + bn_eps)
    wenc_eff = params["wenc_t"] * scale                                  # (M, D)
    benc_eff = (params["benc"] - params["running_mean"]) * scale + params["beta"]
    wenc_p = jnp.pad(wenc_eff, ((0, 0), (0, d_pad - latent_dim)))
    benc_p = jnp.pad(benc_eff, ((0, 0), (0, d_pad - latent_dim)))

    emb = params["emb"]                                                  # (K, D)
    e_pad = jnp.pad(emb, ((0, k_pad - k), (0, d_pad - latent_dim)))
    et_pad = jnp.pad(emb.T, ((0, d_pad - latent_dim), (0, k_pad - k)))
    esq_pad = jnp.pad(jnp.sum(emb * emb, axis=1)[None, :],
                      ((0, 0), (0, k_pad - k)), constant_values=1e30)
    e_dec = jnp.dot(emb, params["wdec_t"])                               # (K, M)
    edec_pad = jnp.pad(e_dec, ((0, k_pad - k), (0, m_pad - motion_dim)))
    e_cat = jnp.concatenate([e_pad, edec_pad], axis=1)                   # (Kp, Dp+Mp)
    bdec_pad = jnp.pad(params["bdec"], ((0, 0), (0, m_pad - motion_dim)))

    # --- row tiling: >=2 tiles (v7x megacore), big tiles for big batches,
    #     ragged tail handled via padding + in-kernel row masking -------------
    if tile_n is None:
        tile_n = int(min(4096, max(8, _round_up(_cdiv(n, 2), 8))))
    num_tiles = _cdiv(n, tile_n)
    n_pad = num_tiles * tile_n
    x_in = jnp.pad(x2d, ((0, n_pad - n), (0, 0))) if n_pad != n else x2d

    const2d = lambda shape: pl.BlockSpec(shape, lambda i: (0, 0))
    kernel = functools.partial(_vq_frame_kernel, tile_n=tile_n, n_valid=n,
                               d_pad=d_pad, k_pad=k_pad)

    out, stats = pl.pallas_call(
        kernel,
        out_shape=(
            jax.ShapeDtypeStruct((n_pad, m_pad), jnp.float32),
            jax.ShapeDtypeStruct((num_tiles, 2, k_pad), jnp.float32),
        ),
        grid_spec=pltpu.PrefetchScalarGridSpec(
            num_scalar_prefetch=0,
            grid=(num_tiles,),
            in_specs=[
                pl.BlockSpec((tile_n, motion_dim), lambda i: (i, 0)),    # x rows
                const2d((motion_dim, d_pad)),                            # W_enc^T (BN folded, padded)
                const2d((1, d_pad)),                                     # b_enc   (BN folded, padded)
                const2d((d_pad, k_pad)),                                 # E^T (padded)
                const2d((1, k_pad)),                                     # |E|^2 (padded lanes = 1e30)
                const2d((k_pad, d_pad + m_pad)),                         # [E | E @ Wdec^T]
                const2d((1, m_pad)),                                     # b_dec (padded)
            ],
            out_specs=[
                pl.BlockSpec((tile_n, m_pad), lambda i: (i, 0)),         # lane-dense decoder out
                pl.BlockSpec((1, 2, k_pad), lambda i: (i, 0, 0)),        # merged partial stats
            ],
        ),
        compiler_params=pltpu.CompilerParams(
            # Tiles are fully independent (partial stats per tile), so the row
            # axis can be split across TensorCores on v7x.
            dimension_semantics=("parallel",),
            vmem_limit_bytes=32 * 1024 * 1024),
    )(x_in, wenc_p, benc_p, et_pad, esq_pad, e_cat, bdec_pad)

    # Tiny final reductions (O(num_tiles * K)) in the wrapper.
    cnt = stats[:, 0, :k]                                                # (T, K)
    sse = stats[:, 1, 0]                                                 # (T,)
    loss = commitment_cost * jnp.sum(sse) / float(n * latent_dim)
    avg_p = jnp.sum(cnt, axis=0) / float(n)
    perp = jnp.exp(-jnp.sum(avg_p * jnp.log(avg_p + 1e-10)))
    y = out[:n, :motion_dim]
    return y[:, :, None], loss, perp


def vq_frame_reference(x, params, *, commitment_cost=0.25, bn_eps=1e-5):
    """Pure-JAX reference mirroring the PyTorch eval-mode forward."""
    h = jnp.squeeze(x, axis=2) @ params["wenc_t"] + params["benc"]
    h = ((h - params["running_mean"]) * jax.lax.rsqrt(params["running_var"] + bn_eps)
         * params["gamma"] + params["beta"])
    emb = params["emb"]
    d = (jnp.sum(h * h, axis=1, keepdims=True) + jnp.sum(emb * emb, axis=1)
         - 2.0 * h @ emb.T)
    idx = jnp.argmin(d, axis=1)
    enc = jax.nn.one_hot(idx, emb.shape[0], dtype=jnp.float32)
    q = enc @ emb
    loss = commitment_cost * jnp.mean((q - h) ** 2)
    avg_p = jnp.mean(enc, axis=0)
    perp = jnp.exp(-jnp.sum(avg_p * jnp.log(avg_p + 1e-10)))
    y = q @ params["wdec_t"] + params["bdec"]
    return y[:, :, None], loss, perp


def make_params(key, motion_dim, latent_dim, num_embeddings):
    ks = jax.random.split(key, 6)
    xavier_enc = (2.0 / (motion_dim + latent_dim)) ** 0.5
    w_enc = jax.random.normal(ks[0], (latent_dim, motion_dim), jnp.float32) * xavier_enc
    b_enc = jax.random.uniform(ks[1], (latent_dim,), jnp.float32,
                               -1.0 / motion_dim ** 0.5, 1.0 / motion_dim ** 0.5)
    xavier_dec = (2.0 / (motion_dim + latent_dim)) ** 0.5
    w_dec = jax.random.normal(ks[2], (motion_dim, latent_dim), jnp.float32) * xavier_dec
    b_dec = jax.random.uniform(ks[3], (motion_dim,), jnp.float32,
                               -1.0 / latent_dim ** 0.5, 1.0 / latent_dim ** 0.5)
    emb = jax.random.uniform(ks[4], (num_embeddings, latent_dim), jnp.float32,
                             -1.0 / num_embeddings, 1.0 / num_embeddings)
    return {
        "wenc_t": w_enc.T,                       # (M, D)
        "benc": b_enc[None, :],                  # (1, D)
        "gamma": jnp.ones((1, latent_dim), jnp.float32),
        "beta": jnp.zeros((1, latent_dim), jnp.float32),
        "running_mean": jnp.zeros((1, latent_dim), jnp.float32),
        "running_var": jnp.ones((1, latent_dim), jnp.float32),
        "emb": emb,                              # (K, D)
        "wdec_t": w_dec.T,                       # (D, M)
        "bdec": b_dec[None, :],                  # (1, M)
    }


if __name__ == "__main__":
    B, MOTION_DIM, LATENT_DIM, VQ_COMPONENTS = 16, 32, 16, 32

    key = jax.random.PRNGKey(0)
    k_x, k_p = jax.random.split(key)
    x = jax.random.normal(k_x, (B, MOTION_DIM, 1), jnp.float32)
    params = make_params(k_p, MOTION_DIM, LATENT_DIM, VQ_COMPONENTS)

    y, loss, perp = vq_frame_forward(x, params)
    jax.block_until_ready((y, loss, perp))

    y_ref, loss_ref, perp_ref = vq_frame_reference(x, params)
    assert jnp.allclose(y, y_ref, atol=1e-4, rtol=1e-4)
    assert jnp.allclose(loss, loss_ref, atol=1e-5, rtol=1e-4)
    assert jnp.allclose(perp, perp_ref, atol=1e-4, rtol=1e-4)

    print("KERNEL_OK")
</pallas_src>

<mosaic_0001>
module attributes {stable_mosaic.version = 11 : i64} {
  func.func @_vq_frame_kernel(%arg0: i32, %arg1: memref<8x32xf32, #tpu.memory_space<vmem>>, %arg2: memref<32x128xf32, #tpu.memory_space<vmem>>, %arg3: memref<1x128xf32, #tpu.memory_space<vmem>>, %arg4: memref<128x128xf32, #tpu.memory_space<vmem>>, %arg5: memref<1x128xf32, #tpu.memory_space<vmem>>, %arg6: memref<128x256xf32, #tpu.memory_space<vmem>>, %arg7: memref<1x128xf32, #tpu.memory_space<vmem>>, %arg8: memref<8x128xf32, #tpu.memory_space<vmem>>, %arg9: memref<1x2x128xf32, #tpu.memory_space<vmem>>) attributes {dimension_semantics = [#tpu.dimension_semantics<parallel>], iteration_bounds = array<i64: 2>, scalar_prefetch = 0 : i64, scratch_operands = 0 : i64, tpu.core_type = #tpu.core_type<tc>, window_params = [{transform_indices = @transform_0, window_bounds = array<i64: 8, 32>}, {pipeline_mode = #tpu.pipeline_mode<synchronous>, transform_indices = @transform_1, window_bounds = array<i64: 32, 128>}, {pipeline_mode = #tpu.pipeline_mode<synchronous>, transform_indices = @transform_2, window_bounds = array<i64: 1, 128>}, {pipeline_mode = #tpu.pipeline_mode<synchronous>, transform_indices = @transform_3, window_bounds = array<i64: 128, 128>}, {pipeline_mode = #tpu.pipeline_mode<synchronous>, transform_indices = @transform_4, window_bounds = array<i64: 1, 128>}, {pipeline_mode = #tpu.pipeline_mode<synchronous>, transform_indices = @transform_5, window_bounds = array<i64: 128, 256>}, {pipeline_mode = #tpu.pipeline_mode<synchronous>, transform_indices = @transform_6, window_bounds = array<i64: 1, 128>}, {transform_indices = @transform_7, window_bounds = array<i64: 8, 128>}, {transform_indices = @transform_8, window_bounds = array<i64: 1, 2, 128>}]} {
    %c0 = arith.constant 0 : index
    %c0_0 = arith.constant 0 : index
    %0 = vector.load %arg1[%c0, %c0_0] : memref<8x32xf32, #tpu.memory_space<vmem>>, vector<8x32xf32>
    %c0_1 = arith.constant 0 : index
    %c0_2 = arith.constant 0 : index
    %1 = vector.load %arg2[%c0_1, %c0_2] : memref<32x128xf32, #tpu.memory_space<vmem>>, vector<32x128xf32>
    %cst = arith.constant dense<0.000000e+00> : vector<8x128xf32>
    %2 = tpu.matmul %0, %1, %cst {dimension_numbers = #tpu.dot_dimension_numbers<[1], [0], [0], [1], [0, 0, 1, 1], [], []>} : vector<8x32xf32>, vector<32x128xf32>, vector<8x128xf32> -> vector<8x128xf32>
    %c0_3 = arith.constant 0 : index
    %c0_4 = arith.constant 0 : index
    %3 = vector.load %arg3[%c0_3, %c0_4] : memref<1x128xf32, #tpu.memory_space<vmem>>, vector<1x128xf32>
    %4 = vector.broadcast %3 : vector<1x128xf32> to vector<8x128xf32>
    %5 = arith.addf %2, %4 : vector<8x128xf32>
    %6 = arith.mulf %5, %5 : vector<8x128xf32>
    %cst_5 = arith.constant dense<0.000000e+00> : vector<8xf32>
    %7 = vector.multi_reduction <add>, %6, %cst_5 [1] : vector<8x128xf32> to vector<8xf32>
    %8 = vector.shape_cast %7 : vector<8xf32> to vector<8x1xf32>
    %c0_6 = arith.constant 0 : index
    %c0_7 = arith.constant 0 : index
    %9 = vector.load %arg5[%c0_6, %c0_7] : memref<1x128xf32, #tpu.memory_space<vmem>>, vector<1x128xf32>
    %10 = vector.broadcast %8 : vector<8x1xf32> to vector<8x128xf32>
    %11 = vector.broadcast %9 : vector<1x128xf32> to vector<8x128xf32>
    %12 = arith.addf %10, %11 : vector<8x128xf32>
    %c0_8 = arith.constant 0 : index
    %c0_9 = arith.constant 0 : index
    %13 = vector.load %arg4[%c0_8, %c0_9] : memref<128x128xf32, #tpu.memory_space<vmem>>, vector<128x128xf32>
    %cst_10 = arith.constant dense<0.000000e+00> : vector<8x128xf32>
    %14 = tpu.matmul %5, %13, %cst_10 {dimension_numbers = #tpu.dot_dimension_numbers<[1], [0], [0], [1], [0, 0, 1, 1], [], []>} : vector<8x128xf32>, vector<128x128xf32>, vector<8x128xf32> -> vector<8x128xf32>
    %cst_11 = arith.constant 2.000000e+00 : f32
    %15 = vector.broadcast %cst_11 : f32 to vector<8x128xf32>
    %16 = arith.mulf %15, %14 : vector<8x128xf32>
    %17 = arith.subf %12, %16 : vector<8x128xf32>
    %cst_12 = arith.constant dense<0x7F800000> : vector<8xf32>
    %18 = vector.multi_reduction <minimumf>, %17, %cst_12 [1] : vector<8x128xf32> to vector<8xf32>
    %19 = vector.shape_cast %18 : vector<8xf32> to vector<8x1xf32>
    %20 = tpu.iota {dimensions = array<i32: 1>} : vector<8x128xi32>
    %21 = vector.broadcast %19 : vector<8x1xf32> to vector<8x128xf32>
    %22 = arith.cmpf ole, %17, %21 : vector<8x128xf32>
    %c128_i32 = arith.constant 128 : i32
    %23 = vector.broadcast %c128_i32 : i32 to vector<8x128xi32>
    %24 = arith.select %22, %20, %23 : vector<8x128xi1>, vector<8x128xi32>
    %cst_13 = arith.constant dense<2147483647> : vector<8xi32>
    %25 = vector.multi_reduction <minsi>, %24, %cst_13 [1] : vector<8x128xi32> to vector<8xi32>
    %26 = vector.shape_cast %25 : vector<8xi32> to vector<8x1xi32>
    %27 = vector.broadcast %26 : vector<8x1xi32> to vector<8x128xi32>
    %28 = arith.cmpi eq, %20, %27 : vector<8x128xi32>
    %29 = arith.extui %28 : vector<8x128xi1> to vector<8x128xi32>
    %30 = arith.sitofp %29 : vector<8x128xi32> to vector<8x128xf32>
    %c0_14 = arith.constant 0 : index
    %c0_15 = arith.constant 0 : index
    %31 = vector.load %arg6[%c0_14, %c0_15] : memref<128x256xf32, #tpu.memory_space<vmem>>, vector<128x256xf32>
    %cst_16 = arith.constant dense<0.000000e+00> : vector<8x256xf32>
    %32 = tpu.matmul %30, %31, %cst_16 {dimension_numbers = #tpu.dot_dimension_numbers<[1], [0], [0], [1], [0, 0, 1, 1], [], []>} : vector<8x128xf32>, vector<128x256xf32>, vector<8x256xf32> -> vector<8x256xf32>
    %33 = vector.extract_strided_slice %32 {offsets = [0, 0], sizes = [8, 128], strides = [1, 1]} : vector<8x256xf32> to vector<8x128xf32>
    %34 = vector.extract_strided_slice %32 {offsets = [0, 128], sizes = [8, 128], strides = [1, 1]} : vector<8x256xf32> to vector<8x128xf32>
    %c0_17 = arith.constant 0 : index
    %c0_18 = arith.constant 0 : index
    %35 = vector.load %arg7[%c0_17, %c0_18] : memref<1x128xf32, #tpu.memory_space<vmem>>, vector<1x128xf32>
    %36 = vector.broadcast %35 : vector<1x128xf32> to vector<8x128xf32>
    %37 = arith.addf %34, %36 : vector<8x128xf32>
    %c0_19 = arith.constant 0 : index
    %c0_20 = arith.constant 0 : index
    %38 = vector.load %arg8[%c0_19, %c0_20] : memref<8x128xf32, #tpu.memory_space<vmem>>, vector<8x128xf32>
    tpu.vector_store %arg8[%c0_19, %c0_20], %37 {strides = array<i32>} : memref<8x128xf32, #tpu.memory_space<vmem>>, vector<8x128xf32>,
    %c8_i32 = arith.constant 8 : i32
    %39 = arith.muli %arg0, %c8_i32 : i32
    %40 = tpu.iota {dimensions = array<i32: 0>} : vector<8x128xi32>
    %41 = vector.broadcast %39 : i32 to vector<8x128xi32>
    %42 = arith.addi %41, %40 : vector<8x128xi32>
    %43 = tpu.iota {dimensions = array<i32: 0>} : vector<8x128xi32>
    %44 = vector.broadcast %39 : i32 to vector<8x128xi32>
    %45 = arith.addi %44, %43 : vector<8x128xi32>
    %c16_i32 = arith.constant 16 : i32
    %46 = vector.broadcast %c16_i32 : i32 to vector<8x128xi32>
    %47 = arith.cmpi slt, %42, %46 : vector<8x128xi32>
    %cst_21 = arith.constant 0.000000e+00 : f32
    %48 = vector.broadcast %cst_21 : f32 to vector<8x128xf32>
    %49 = arith.select %47, %30, %48 : vector<8x128xi1>, vector<8x128xf32>
    %c16_i32_22 = arith.constant 16 : i32
    %50 = vector.broadcast %c16_i32_22 : i32 to vector<8x128xi32>
    %51 = arith.cmpi slt, %45, %50 : vector<8x128xi32>
    %52 = arith.subf %33, %5 : vector<8x128xf32>
    %cst_23 = arith.constant 0.000000e+00 : f32
    %53 = vector.broadcast %cst_23 : f32 to vector<8x128xf32>
    %54 = arith.select %51, %52, %53 : vector<8x128xi1>, vector<8x128xf32>
    %cst_24 = arith.constant dense<0.000000e+00> : vector<128xf32>
    %55 = vector.multi_reduction <add>, %49, %cst_24 [0] : vector<8x128xf32> to vector<128xf32>
    %56 = vector.shape_cast %55 : vector<128xf32> to vector<1x128xf32>
    %57 = arith.mulf %54, %54 : vector<8x128xf32>
    %58 = vector.shape_cast %57 : vector<8x128xf32> to vector<1x8x128xf32>
    %cst_25 = arith.constant dense<0.000000e+00> : vector<1xf32>
    %59 = vector.multi_reduction <add>, %58, %cst_25 [1, 2] : vector<1x8x128xf32> to vector<1xf32>
    %60 = vector.shape_cast %59 : vector<1xf32> to vector<1x1x1xf32>
    %61 = vector.extract %60[0, 0, 0] : f32 from vector<1x1x1xf32>
    %62 = tpu.iota {dimensions = array<i32: 0>} : vector<2x128xi32>
    %63 = tpu.iota {dimensions = array<i32: 1>} : vector<2x128xi32>
    %c0_i32 = arith.constant 0 : i32
    %64 = vector.broadcast %c0_i32 : i32 to vector<2x128xi32>
    %65 = arith.cmpi eq, %62, %64 : vector<2x128xi32>
    %66 = vector.shape_cast %56 : vector<1x128xf32> to vector<1x128xf32>
    %67 = vector.broadcast %66 : vector<1x128xf32> to vector<2x128xf32>
    %c0_i32_26 = arith.constant 0 : i32
    %68 = vector.broadcast %c0_i32_26 : i32 to vector<2x128xi32>
    %69 = arith.cmpi eq, %63, %68 : vector<2x128xi32>
    %cst_27 = arith.constant 0.000000e+00 : f32
    %70 = vector.broadcast %61 : f32 to vector<2x128xf32>
    %71 = vector.broadcast %cst_27 : f32 to vector<2x128xf32>
    %72 = arith.select %69, %70, %71 : vector<2x128xi1>, vector<2x128xf32>
    %73 = arith.select %65, %67, %72 : vector<2x128xi1>, vector<2x128xf32>
    %74 = vector.shape_cast %73 : vector<2x128xf32> to vector<1x2x128xf32>
    %c0_28 = arith.constant 0 : index
    %c0_29 = arith.constant 0 : index
    %c0_30 = arith.constant 0 : index
    %75 = vector.load %arg9[%c0_28, %c0_29, %c0_30] : memref<1x2x128xf32, #tpu.memory_space<vmem>>, vector<1x2x128xf32>
    tpu.vector_store %arg9[%c0_28, %c0_29, %c0_30], %74 {strides = array<i32>} : memref<1x2x128xf32, #tpu.memory_space<vmem>>, vector<1x2x128xf32>,
    return
  }
  func.func @transform_0(%arg0: i32) -> (i32, i32) {
    %c0_i32 = arith.constant 0 : i32
    %c0_i32_0 = arith.constant 0 : i32
    return %arg0, %c0_i32 : i32, i32
  }
  func.func @transform_1(%arg0: i32) -> (i32, i32) {
    %c0_i32 = arith.constant 0 : i32
    %c0_i32_0 = arith.constant 0 : i32
    %c0_i32_1 = arith.constant 0 : i32
    return %c0_i32, %c0_i32_0 : i32, i32
  }
  func.func @transform_2(%arg0: i32) -> (i32, i32) {
    %c0_i32 = arith.constant 0 : i32
    %c0_i32_0 = arith.constant 0 : i32
    %c0_i32_1 = arith.constant 0 : i32
    return %c0_i32, %c0_i32_0 : i32, i32
  }
  func.func @transform_3(%arg0: i32) -> (i32, i32) {
    %c0_i32 = arith.constant 0 : i32
    %c0_i32_0 = arith.constant 0 : i32
    %c0_i32_1 = arith.constant 0 : i32
    return %c0_i32, %c0_i32_0 : i32, i32
  }
  func.func @transform_4(%arg0: i32) -> (i32, i32) {
    %c0_i32 = arith.constant 0 : i32
    %c0_i32_0 = arith.constant 0 : i32
    %c0_i32_1 = arith.constant 0 : i32
    return %c0_i32, %c0_i32_0 : i32, i32
  }
  func.func @transform_5(%arg0: i32) -> (i32, i32) {
    %c0_i32 = arith.constant 0 : i32
    %c0_i32_0 = arith.constant 0 : i32
    %c0_i32_1 = arith.constant 0 : i32
    return %c0_i32, %c0_i32_0 : i32, i32
  }
  func.func @transform_6(%arg0: i32) -> (i32, i32) {
    %c0_i32 = arith.constant 0 : i32
    %c0_i32_0 = arith.constant 0 : i32
    %c0_i32_1 = arith.constant 0 : i32
    return %c0_i32, %c0_i32_0 : i32, i32
  }
  func.func @transform_7(%arg0: i32) -> (i32, i32) {
    %c0_i32 = arith.constant 0 : i32
    %c0_i32_0 = arith.constant 0 : i32
    return %arg0, %c0_i32 : i32, i32
  }
  func.func @transform_8(%arg0: i32) -> (i32, i32, i32) {
    %c0_i32 = arith.constant 0 : i32
    %c0_i32_0 = arith.constant 0 : i32
    %c0_i32_1 = arith.constant 0 : i32
    return %arg0, %c0_i32, %c0_i32_0 : i32, i32, i32
  }
}

</mosaic_0001>

<bundles_post_ra>
// kernel: tpu_custom_call.1
= control target key start
LH: loop header
LB: loop body
LE: loop exit
PB: predicated region body
PF: predicated region fallthrough
CT: control target
= control target key end

     0   :  { %14 = vsyncpa [#allocation3], 0  ;;  %s1748_s0 = inlined_call_operand.hbm [shape: f32[16,32], index: 0, kind: input, shape index: {}]   ;;  %s1749_s1 = inlined_call_operand.hbm [shape: f32[32,128], index: 1, kind: input, shape index: {}]   ;;  %s1750_s2 = inlined_call_operand.vmem [shape: f32[1,128], index: 2, kind: input, shape index: {}]   ;;  %s1751_s3 = inlined_call_operand.hbm [shape: f32[128,128], index: 3, kind: input, shape index: {}]   ;;  %s1752_s4 = inlined_call_operand.vmem [shape: f32[1,128], index: 4, kind: input, shape index: {}]   ;;  %s1753_s5 = inlined_call_operand.hbm [shape: f32[128,256], index: 5, kind: input, shape index: {}]   ;;  %s1754_s6 = inlined_call_operand.vmem [shape: f32[1,128], index: 6, kind: input, shape index: {}]   ;;  %s1755_s7 = inlined_call_operand.hbm [shape: f32[16,128], index: 7, kind: output, shape index: {0}]   ;;  %s1756_s8 = inlined_call_operand.hbm [shape: f32[2,2,128], index: 8, kind: output, shape index: {1}]  }
   0x1   :  { %16 = vsyncpa [#allocation3 + $0x1], 0 }
   0x2   :  { %17 = vsyncpa [#allocation6], 0 }
   0x3   :  { %18 = vsyncpa [#allocation9], 0 }
   0x4   :  { %19 = vsyncpa [#allocation4], 0 }
   0x5   :  { %21 = vsyncpa [#allocation4 + $0x1], 0 }
   0x6   :  { %22 = vsyncpa [#allocation12], 0 }
   0x7   :  { %24 = vsyncpa [#allocation12 + $0x1], 0  ;;  %s1421_s27 = smov 0   ;;  %s1423_s28 = smov 0  }
   0x8   :  { %s1425_s29 = smov 0   ;;  %s1427_s30 = smov 0  }
   0x9 LB: > { %1762 = sst [smem:[#allocation18_spill]] %s1348_s27  ;;  %s1442_s9 = sadd.s32 4294967295, %s1360_s30   ;;  %s1360_s30 = sphi %s1427_s30, %s1786_s30   ;;  %s1356_s29 = sphi %s1425_s29, %s1785_s29   ;;  %s1352_s28 = sphi %s1423_s28, %s1784_s28   ;;  %s1348_s27 = sphi %s1421_s27, %s1783_s27  }
   0xa   : > { %s890_s10 = sadd.s32 4294967294, %s1360_s30   ;;  %p50_p0 = scmp.ne.s32.totalorder %s1352_s28, %s1348_s27 }
   0xb   : > { %p1757_p1 = scmp.eq.s32.totalorder %s1442_s9, 0  ;;  %p206_p3 = scmp.eq.s32.totalorder %s890_s10, 1 }
   0xc   : > { %p891_p5 = scmp.ge.s32.totalorder %s1360_s30, 1  ;;  %p239_p7 = scmp.lt.s32.totalorder %s1360_s30, 3 }
   0xd   : > { %p1451_p4 = por %p1757_p1, %p50_p0  ;;  %p1456_p6 = por %p206_p3, %p50_p0 }
   0xe   : > { %p1461_p8 = pnand %p891_p5, %p239_p7  ;;  %s1362_s14 = smov [#allocation5]  }
   0xf   : > { %s1763_s11 = scalar_select %p1451_p4, 1, 0 }
  0x10   : > { %s1764_s12 = scalar_select %p1456_p6, 1, 0 }
  0x11   : > { %s1766_s13 = scalar_select %p1461_p8, 1, 0 }
  0x12   : > { %1765 = sst [smem:[#allocation19_spill]] %s1764_s12  ;;  %s251_s15 = sshll.u32 %s1362_s14, 4  ;;  %s1465_s15 = int_to_ptr.vmem [resolvable:$true] %s251_s15 }
  0x13   : > { %p1068_p9 = pneg %p1461_p8  ;;  %s1363_s17 = smov [#allocation7]  }
  0x14   : > { %s267_s18 = sshll.u32 %s1363_s17, 4  ;;  %s1364_s19 = smov [#allocation8]   ;;  %s1476_s18 = int_to_ptr.vmem [resolvable:$true] %s267_s18 }
  0x15   : > { %p1472_p11 = pnand %p1068_p9, %p1757_p1  ;;  %s1478_s20 = sshll.u32 %s1364_s19, 4  ;;  %s284_s20 = int_to_ptr.vmem [resolvable:$true] %s1478_s20 }
  0x16   : > { %s1140_s23 = scalar_lea.hbm %s1749_s1, 512 }
  0x17   : > { %p1141_p12 = scmp.ne.s32.totalorder %s1749_s1, %s1140_s23  ;;  %p1488_p13 = pneg %p1472_p11 }
  0x18   : > { %p1147_p5 = scmp.lt.u32.totalorder %s1140_s23, %s1749_s1 }
  0x19   : > { %p1143_p0 = pnand %p1488_p13, %p1141_p12 }
  0x1b   : > { %p1144_p3 = pneg %p1143_p0 }
  0x1d   : > { %p1149_p7 = pnand %p1147_p5, %p1144_p3 }
  0x1f   : > { %1152 = shalt.err (!%p1149_p7)
}
  0x20   : > { %s1153_s17 = scalar_lea.vmem %s1465_s15, 512  ;;  %p1161_p2 = scmp.lt.s32.totalorder %s1465_s15, %s1465_s15 }
  0x21   : > { %p1154_p9 = scmp.ne.s32.totalorder %s1465_s15, %s1153_s17  ;;  %p1162_p6 = scmp.lt.s32.totalorder %s1153_s17, %s1153_s17 }
  0x23   : > { %p1156_p10 = pnand %p1154_p9, %p1488_p13  ;;  %p1163_p12 = por %p1162_p6, %p1161_p2 }
  0x25   : > { %p1157_p1 = pneg %p1156_p10 }
  0x27   : > { %p1164_p0 = pnand %p1163_p12, %p1157_p1 }
  0x29   : > { %1167 = shalt.err (!%p1164_p0)
}
  0x2a   : > { %s1365_s19 = smov 128   ;;  %s1366_s21 = smov 8  }
  0x2b   : > { %1071 = dma.hbm_to_vmem [thread:$0]  (!%p1472_p11), %s1749_s1, 512, %s1465_s15, [#allocation6], %s1365_s19, %s1365_s19, %s1366_s21  }
  0x2c   : > { %s1168_s10 = scalar_lea.hbm %s1751_s3, 2048 }
  0x2d   : > { %p1169_p2 = scmp.ne.s32.totalorder %s1751_s3, %s1168_s10  ;;  %p1175_p10 = scmp.lt.u32.totalorder %s1168_s10, %s1751_s3 }
  0x2f   : > { %p1171_p1 = pnand %p1169_p2, %p1488_p13 }
  0x31   : > { %p1172_p6 = pneg %p1171_p1 }
  0x33   : > { %p1177_p3 = pnand %p1175_p10, %p1172_p6 }
  0x35   : > { %1180 = shalt.err (!%p1177_p3)
}
  0x36   : > { %s1181_s15 = scalar_lea.vmem %s1476_s18, 2048  ;;  %p1189_p12 = scmp.lt.s32.totalorder %s1476_s18, %s1476_s18 }
  0x37   : > { %p1182_p5 = scmp.ne.s32.totalorder %s1476_s18, %s1181_s15  ;;  %p1190_p0 = scmp.lt.s32.totalorder %s1181_s15, %s1181_s15 }
  0x39   : > { %p1184_p7 = pnand %p1182_p5, %p1488_p13  ;;  %p1191_p2 = por %p1190_p0, %p1189_p12 }
  0x3b   : > { %p1185_p9 = pneg %p1184_p7 }
  0x3d   : > { %p1192_p1 = pnand %p1191_p2, %p1185_p9 }
  0x3f   : > { %1195 = shalt.err (!%p1192_p1)
}
  0x40   : > { %1074 = dma.hbm_to_vmem [thread:$0]  (!%p1472_p11), %s1751_s3, 2048, %s1476_s18, [#allocation6], %s1365_s19, %s1365_s19, %s1366_s21  }
  0x41   : > { %s1196_s24 = scalar_lea.hbm %s1753_s5, 4096 }
  0x42   : > { %p1197_p6 = scmp.ne.s32.totalorder %s1753_s5, %s1196_s24  ;;  %p1203_p5 = scmp.lt.u32.totalorder %s1196_s24, %s1753_s5 }
  0x44   : > { %p1199_p10 = pnand %p1197_p6, %p1488_p13 }
  0x46   : > { %p1200_p3 = pneg %p1199_p10 }
  0x48   : > { %p1205_p7 = pnand %p1203_p5, %p1200_p3 }
  0x4a   : > { %1208 = shalt.err (!%p1205_p7)
}
  0x4b   : > { %s1209_s15 = scalar_lea.vmem %s284_s20, 4096  ;;  %p1217_p2 = scmp.lt.s32.totalorder %s284_s20, %s284_s20 }
  0x4c   : > { %p1210_p9 = scmp.ne.s32.totalorder %s284_s20, %s1209_s15  ;;  %p1218_p1 = scmp.lt.s32.totalorder %s1209_s15, %s1209_s15 }
  0x4e   : > { %p1212_p12 = pnand %p1210_p9, %p1488_p13  ;;  %p1219_p4 = por %p1218_p1, %p1217_p2 }
  0x50   : > { %p1213_p0 = pneg %p1212_p12 }
  0x52   : > { %p1220_p8 = pnand %p1219_p4, %p1213_p0 }
  0x54   : > { %1223 = shalt.err (!%p1220_p8)
}
  0x55   : > { %s1367_s18 = smov 256   ;;  %s1368_s26 = smov 16  }
  0x56   : > { %1077 = dma.hbm_to_vmem [thread:$0]  (!%p1472_p11), %s1753_s5, 4096, %s284_s20, [#allocation9], %s1367_s18, %s1367_s18, %s1368_s26  }
  0x57   : > { %s1552_s27 = sadd.s32 1, %s1360_s30   ;;  %s37_s22 = sadd.s32 1, %s1356_s29 }
  0x58   : > { %s34_s12 = ssub.s32 %s1360_s30, %s1552_s27  ;;  %p44_p8 = scmp.ne.s32.totalorder %s1356_s29, %s1352_s28 }
  0x59   : > { %p35_p4 = scmp.eq.s32.totalorder %s34_s12, 0  ;;  %p45_p13 = scmp.eq.s32.totalorder %s1360_s30, 0 }
  0x5a   : > { %p1092_p6 = scmp.lt.s32.totalorder %s1360_s30, 2  ;;  %p1769_p3 = scmp.eq.s32.totalorder %s1442_s9, 1 }
  0x5b   : > { %s1562_s23 = scalar_select %p35_p4, %s1356_s29, %s37_s22  }
  0x5c   : > { %p46_p10 = por %p45_p13, %p44_p8  ;;  %p1566_p5 = por %p1769_p3, %p44_p8 }
  0x5d   : > { %s300_s16 = sand.u32 1, %s1356_s29   ;;  %s897_s25 = sshll.u32 %s1360_s30, 7 }
  0x5e   : > { %s896_s20 = sshll.u32 %s300_s16, 3  ;;  %s1575_s17 = scalar_lea.hbm %s1748_s0, %s897_s25 }
  0x5f   : > { %s304_s15 = scalar_lea.vmem [#allocation2], %s896_s20  ;;  %p1577_p11 = pnand %p1092_p6, %p46_p10 }
  0x60   : > { %s311_s18 = sshll.u32 %s304_s15, 4  ;;  %s301_s19 = scalar_lea.sflag [#allocation3], %s300_s16  ;;  %s1581_s18 = int_to_ptr.vmem [resolvable:$true] %s311_s18 }
  0x61   : > { %s1224_s21 = scalar_lea.hbm %s1575_s17, 128  ;;  %p1226_p9 = pneg %p1577_p11 }
  0x62   : > { %p1225_p7 = scmp.ne.s32.totalorder %s1575_s17, %s1224_s21  ;;  %s1229_s25 = scalar_lea.hbm %s1748_s0, 256 }
  0x63   : > { %p1230_p2 = scmp.lt.u32.totalorder %s1575_s17, %s1748_s0  ;;  %p1231_p1 = scmp.lt.u32.totalorder %s1229_s25, %s1224_s21 }
  0x64   : > { %p1227_p12 = pnand %p1226_p9, %p1225_p7  ;;  %p1233_p8 = scmp.lt.u32.totalorder %s1224_s21, %s1575_s17 }
  0x65   : > { %p1232_p4 = por %p1231_p1, %p1230_p2 }
  0x66   : > { %p1228_p0 = pneg %p1227_p12 }
  0x67   : > { %p1234_p13 = por %p1233_p8, %p1232_p4 }
  0x69   : > { %p1235_p6 = pnand %p1234_p13, %p1228_p0 }
  0x6b   : > { %1238 = shalt.err (!%p1235_p6)
}
  0x6c   : > { %s1239_s16 = scalar_lea.vmem %s1581_s18, 128  ;;  %s1369_s14 = smov [#allocation2]  }
  0x6d   : > { %p1240_p10 = scmp.ne.s32.totalorder %s1581_s18, %s1239_s16  ;;  %s1244_s15 = sshll.u32 %s1369_s14, 4  ;;  %s1245_s15 = int_to_ptr.vmem [resolvable:$false] %s1244_s15 }
  0x6e   : > { %s1246_s12 = scalar_lea.vmem %s1245_s15, 256  ;;  %p1247_p12 = scmp.lt.s32.totalorder %s1581_s18, %s1245_s15 }
  0x6f   : > { %p1242_p3 = pnand %p1240_p10, %p1226_p9  ;;  %p1248_p2 = scmp.lt.s32.totalorder %s1246_s12, %s1239_s16 }
  0x71   : > { %p1243_p7 = pneg %p1242_p3  ;;  %p1249_p1 = por %p1248_p2, %p1247_p12 }
  0x73   : > { %p1250_p4 = pnand %p1249_p1, %p1243_p7 }
  0x75   : > { %1253 = shalt.err (!%p1250_p4)
}
  0x76   : > { %1081 = dma.hbm_to_vmem [thread:$0]  (!%p1577_p11), %s1575_s17, 128, %s1581_s18, %s301_s19  }
  0x77   : > { %p1772_p0 = scmp.ne.s32.totalorder %s1766_s13, 0 }
  0x78   : > { %s1611_s21 = sand.u32 (!%p1772_p0), 1, %s1352_s28   ;;  %p1773_p9 = scmp.ne.s32.totalorder (!%p1772_p0), %s1763_s11, 0 }
  0x79   : > { %320 = sbr.rel (%p1772_p0) target bundleno = 1454 (0x5ae), region = 48  ;;  %s899_s22 = sshll.u32 (!%p1772_p0), %s1611_s21, 3 }
  0x7a   : > { %s323_s25 = scalar_lea.sflag (!%p1772_p0), [#allocation3], %s1611_s21  ;;  %s1617_s20 = scalar_lea.vmem (!%p1772_p0), [#allocation2], %s899_s22 }
  0x80   : > { %1327 = dma.done.wait (%p1773_p9), %s323_s25, 128  }
  0x81   : > { %1329 = vsyncadd (%p1773_p9), %s323_s25, 4294967168  ;;  %p1774_p11 = scmp.eq.s32.totalorder %s1442_s9, 0 }
  0x83   : > { %1331 = dma.done.wait (%p1774_p11), [#allocation6], 2560   ;;  %p1775_p8 = pmov %p1774_p11 }
  0x85   : > { %1333 = vsyncadd (%p1775_p8), [#allocation6], 4294964736  ;;  %p1776_p13 = pmov %p1775_p8 }
  0x86   : > { %p1777_p6 = pmov %p1775_p8 }
  0x87   : > { %1335 = dma.done.wait (%p1776_p13), [#allocation9], 4096  }
  0x88   : > { %1337 = vsyncadd (%p1777_p6), [#allocation9], 4294963200  ;;  %v1370_v0 = vmov 0.0|0.0   ;;  %vm1371_vm0 = vmmov 0   ;;  %v1372_v1 = vmov 0.0   ;;  %v377_v2 = vld [vmem:[#allocation5] sm:$0xff]  ;;  %v563_v45 = vlaneseq }
  0x89   : > { %986 = vmatprep.subr.bf16.mxu0 %v1370_v0  ;;  %948 = vmatprep.mubr.msk.f32.mxu0 %vm1371_vm0, %v1372_v1  ;;  %v378_v3 = vld [vmem:[#allocation5 + $0x8] sm:$0xff]  ;;  %v379_v4 = vld [vmem:[#allocation5 + $0x10] sm:$0xff]  ;;  %v380_v6 = vld [vmem:[#allocation5 + $0x18] sm:$0xff]  ;;  %vm388_vm1 = vcmask 261120   ;;  %s911_s26 = sshll.u32 %s1442_s9, 3  ;;  %s368_s16 = scalar_lea.vmem [#allocation10], %s899_s22 }
  0x8a   : > { %992 = vmatprep.subr.bf16.mxu1 %v1370_v0  ;;  %983 = vmatprep.mubr.msk.f32.mxu1 %vm1371_vm0, %v1372_v1  ;;  %v987_v5 = vpack.c.bf16 %v378_v3, %v377_v2  ;;  %v473_v7 = vld [vmem:[#allocation7] sm:$0xff]  ;;  %v474_v8 = vld [vmem:[#allocation7 + $0x8] sm:$0xff]  ;;  %v475_v9 = vld [vmem:[#allocation7 + $0x10] sm:$0xff]  ;;  %v990_v11 = vpack.c.bf16 %v380_v6, %v379_v4  ;;  %v1647_v46 = vand.u32 127, %v563_v45  ;;  %s914_s14 = sshll.u32 %s1442_s9, 7  ;;  %s746_s15 = sshll.u32 %s368_s16, 4  ;;  %s747_s15 = int_to_ptr.vmem [resolvable:$true] %s746_s15 }
  0x8b   : > { %v476_v10 = vld [vmem:[#allocation7 + $0x18] sm:$0xff]  ;;  %v993_v12 = vpack.c.bf16 %v474_v8, %v473_v7  ;;  %v477_v14 = vld [vmem:[#allocation7 + $0x20] sm:$0xff]  ;;  %v478_v15 = vld [vmem:[#allocation7 + $0x28] sm:$0xff]  ;;  %s728_s11 = scalar_lea.sflag [#allocation4], %s1611_s21  ;;  %s1254_s13 = scalar_lea.vmem %s747_s15, 128 }
  0x8c   : > { %988 = vmatpush3.bf16.msra.mxu0 %v987_v5  ;;  %v996_v13 = vpack.c.bf16 %v476_v10, %v475_v9  ;;  %v376_v16 = vld [vmem:[%s1617_s20] sm:$0xff]  ;;  %v999_v17 = vpack.c.bf16 %v478_v15, %v477_v14  ;;  %v481_v21 = vld [vmem:[#allocation7 + $0x40] sm:$0xff]  ;;  %v482_v22 = vld [vmem:[#allocation7 + $0x48] sm:$0xff]  ;;  %s1673_s20 = scalar_lea.hbm %s1755_s7, %s914_s14  ;;  %p1255_p10 = scmp.ne.s32.totalorder %s747_s15, %s1254_s13 }
  0x8d   : > { %989 = vmatprep.subr.bf16.mxu0 %v1370_v0  ;;  %994 = vmatpush3.bf16.msra.mxu1 %v993_v12  ;;  %v479_v18 = vld [vmem:[#allocation7 + $0x30] sm:$0xff]  ;;  %v480_v19 = vld [vmem:[#allocation7 + $0x38] sm:$0xff]  ;;  %v1005_v23 = vpack.c.bf16 %v482_v22, %v481_v21  ;;  %v485_v27 = vld [vmem:[#allocation7 + $0x60] sm:$0xff]  ;;  %s1374_s17 = smov [#allocation10]  }
  0x8e   : > { %995 = vmatprep.subr.bf16.mxu1 %v1370_v0  ;;  %v1002_v20 = vpack.c.bf16 %v480_v19, %v479_v18  ;;  %v483_v24 = vld [vmem:[#allocation7 + $0x50] sm:$0xff]  ;;  %v484_v25 = vld [vmem:[#allocation7 + $0x58] sm:$0xff]  ;;  %v486_v28 = vld [vmem:[#allocation7 + $0x68] sm:$0xff]  ;;  %p1256_p3 = pnand %p1255_p10, %p1566_p5  ;;  %s1258_s18 = sshll.u32 %s1374_s17, 4  ;;  %s1259_s18 = int_to_ptr.vmem [resolvable:$false] %s1258_s18 }
  0x8f   : > { %v1008_v26 = vpack.c.bf16 %v484_v25, %v483_v24  ;;  %v1011_v29 = vpack.c.bf16 %v486_v28, %v485_v27  ;;  %v487_v30 = vld [vmem:[#allocation7 + $0x70] sm:$0xff]  ;;  %v488_v31 = vld [vmem:[#allocation7 + $0x78] sm:$0xff]  ;;  %v585_v51 = vld [vmem:[#allocation8 + $0x8] sm:$0xff]  ;;  %s1260_s22 = scalar_lea.vmem %s1259_s18, 256  ;;  %p1261_p12 = scmp.lt.s32.totalorder %s747_s15, %s1259_s18 }
  0x90   : > { %991 = vmatpush3.bf16.msra.mxu0 %v990_v11  ;;  %v1014_v32 = vpack.c.bf16 %v488_v31, %v487_v30  ;;  %v905_v33 = vld [vmem:[%s1750_s2] ss:$0 sm:$0xff]  ;;  %v587_v52 = vld [vmem:[#allocation8 + $0x18] sm:$0xff]  ;;  %v584_v53 = vld [vmem:[#allocation8] sm:$0xff]  ;;  %p1257_p7 = pneg %p1256_p3  ;;  %p1262_p2 = scmp.lt.s32.totalorder %s1260_s22, %s1254_s13 }
  0x91   : > { %997 = vmatpush3.bf16.msra.mxu1 %v996_v13  ;;  %v907_v38 = vld [vmem:[%s1752_s4] ss:$0 sm:$0xff]  ;;  %v1016_v54 = vpack.c.bf16 %v587_v52, %v585_v51  ;;  %v589_v56 = vld [vmem:[#allocation8 + $0x28] sm:$0xff]  ;;  %v591_v57 = vld [vmem:[#allocation8 + $0x38] sm:$0xff] }
  0x92   : > { %998 = vmatprep.subr.bf16.mxu1 %v1370_v0  ;;  %v586_v55 = vld [vmem:[#allocation8 + $0x10] sm:$0xff]  ;;  %v1020_v59 = vpack.c.bf16 %v591_v57, %v589_v56  ;;  %v588_v60 = vld [vmem:[#allocation8 + $0x20] sm:$0xff]  ;;  %v593_v62 = vld [vmem:[#allocation8 + $0x48] sm:$0xff]  ;;  %p1263_p1 = por %p1262_p2, %p1261_p12 }
  0x93   : > { %949 = vmatmul.mubr.msk.f32.vlgmr.msra.gmra.mrb[0].mxu0 %vm388_vm1, %v376_v16  ;;  %v1018_v58 = vpack.c.bf16 %v586_v55, %v584_v53  ;;  %v590_v61 = vld [vmem:[#allocation8 + $0x30] sm:$0xff]  ;;  %1017 = vmatprep.subr.bf16.mxu0 %v1016_v54  ;;  %v595_v63 = vld [vmem:[#allocation8 + $0x58] sm:$0xff]  ;;  %v592_v3 = vld [vmem:[#allocation8 + $0x40] sm:$0xff] }
  0x94   : > { %680 = vmatprep.mubr.f32.mxu0 %v1372_v1  ;;  %v1024_v2 = vpack.c.bf16 %v595_v63, %v593_v62  ;;  %v594_v4 = vld [vmem:[#allocation8 + $0x50] sm:$0xff]  ;;  %v597_v5 = vld [vmem:[#allocation8 + $0x68] sm:$0xff]  ;;  %v599_v6 = vld [vmem:[#allocation8 + $0x78] sm:$0xff]  ;;  %p1264_p4 = pnand %p1263_p1, %p1257_p7 }
  0x95   : > { %1000 = vmatpush3.bf16.msra.mxu1 %v999_v17  ;;  %1019 = vmatpush1.bf16.msra.mxu0 %v1018_v58  ;;  %v1026_v7 = vpack.c.bf16 %v594_v4, %v592_v3  ;;  %v1028_v8 = vpack.c.bf16 %v599_v6, %v597_v5  ;;  %v596_v9 = vld [vmem:[#allocation8 + $0x60] sm:$0xff]  ;;  %v598_v10 = vld [vmem:[#allocation8 + $0x70] sm:$0xff]  ;;  %v601_v11 = vld [vmem:[#allocation8 + $0x88] sm:$0xff] }
  0x96   : > { %1001 = vmatprep.subr.bf16.mxu1 %v1370_v0  ;;  %1021 = vmatprep.subr.bf16.mxu0 %v1020_v59  ;;  %v603_v12 = vld [vmem:[#allocation8 + $0x98] sm:$0xff]  ;;  %v1030_v13 = vpack.c.bf16 %v598_v10, %v596_v9  ;;  %v600_v15 = vld [vmem:[#allocation8 + $0x80] sm:$0xff]  ;;  %v602_v16 = vld [vmem:[#allocation8 + $0x90] sm:$0xff] }
  0x97   : > { %v1032_v14 = vpack.c.bf16 %v603_v12, %v601_v11  ;;  %v605_v17 = vld [vmem:[#allocation8 + $0xa8] sm:$0xff]  ;;  %v607_v18 = vld [vmem:[#allocation8 + $0xb8] sm:$0xff]  ;;  %v1034_v19 = vpack.c.bf16 %v602_v16, %v600_v15  ;;  %v604_v21 = vld [vmem:[#allocation8 + $0xa0] sm:$0xff] }
  0x98   : > { %v606_v22 = vld [vmem:[#allocation8 + $0xb0] sm:$0xff]  ;;  %v611_v24 = vld [vmem:[#allocation8 + $0xd8] sm:$0xff]  ;;  %v608_v27 = vld [vmem:[#allocation8 + $0xc0] sm:$0xff] }
  0x99   : > { %1003 = vmatpush3.bf16.msra.mxu1 %v1002_v20  ;;  %v1036_v20 = vpack.c.bf16 %v607_v18, %v605_v17  ;;  %v1038_v25 = vpack.c.bf16 %v606_v22, %v604_v21  ;;  %v610_v28 = vld [vmem:[#allocation8 + $0xd0] sm:$0xff] }
  0x9a   : > { %1004 = vmatprep.subr.bf16.mxu1 %v1370_v0  ;;  %v910_v52 = vld [vmem:[%s1754_s6] ss:$0 sm:$0xff] }
  0x9d   : > { %1006 = vmatpush3.bf16.msra.mxu1 %v1005_v23  ;;  %v609_v23 = vld [vmem:[#allocation8 + $0xc8] sm:$0xff] }
  0x9e   : > { %1007 = vmatprep.subr.bf16.mxu1 %v1370_v0 }
  0xa1   : > { %1009 = vmatpush3.bf16.msra.mxu1 %v1008_v26  ;;  %v1040_v26 = vpack.c.bf16 %v611_v24, %v609_v23 }
  0xa2   : > { %1010 = vmatprep.subr.bf16.mxu1 %v1370_v0 }
  0xa5   : > { %1012 = vmatpush3.bf16.msra.mxu1 %v1011_v29  ;;  %v1042_v29 = vpack.c.bf16 %v610_v28, %v608_v27 }
  0xa6   : > { %1013 = vmatprep.subr.bf16.mxu1 %v1370_v0  ;;  %v1022_v0 = vpack.c.bf16 %v590_v61, %v588_v60 }
  0xa8   : > { %1023 = vmatpush1.bf16.msra.mxu0 %v1022_v0 }
  0xa9   : > { %1015 = vmatpush3.bf16.msra.mxu1 %v1014_v32  ;;  %1025 = vmatprep.subr.bf16.mxu0 %v1024_v2 }
  0xac   : > { %1027 = vmatpush1.bf16.msra.mxu0 %v1026_v7 }
  0xad   : > { %1029 = vmatprep.subr.bf16.mxu0 %v1028_v8 }
  0xb0   : > { %1031 = vmatpush1.bf16.msra.mxu0 %v1030_v13 }
  0xb1   : > { %1033 = vmatprep.subr.bf16.mxu0 %v1032_v14 }
  0xb4   : > { %1035 = vmatpush1.bf16.msra.mxu0 %v1034_v19 }
  0xb5   : > { %1037 = vmatprep.subr.bf16.mxu0 %v1036_v20 }
  0xb8   : > { %1039 = vmatpush1.bf16.msra.mxu0 %v1038_v25 }
  0xb9   : > { %1041 = vmatprep.subr.bf16.mxu0 %v1040_v26 }
  0xbc   : > { %1043 = vmatpush1.bf16.msra.mxu0 %v1042_v29 }
 0x166   : > { %v458_v34 = vpop.f32.mrb[0].mxu0 }
 0x167   : > { %v1638_v35 = vadd.f32 %v905_v33, %v458_v34  ;;  %v950_v36 = vpop.f32.mrb[1].mxu0  ;;  %v613_v34 = vld [vmem:[#allocation8 + $0xe8] sm:$0xff] }
 0x168   : > { %v615_v36 = vld [vmem:[#allocation8 + $0xf8] sm:$0xff] }
 0x169   : > { %984 = vmatmul.mubr.f32.vlgmr.msra.gmra.mrb[0].mxu1 %v1638_v35  ;;  %v462_v37 = vmul.f32 %v1638_v35, %v1638_v35 }
 0x16b   : > { %463 = vadd.xlane.f32.xlu0 %v462_v37  ;;  %v1044_v37 = vpack.c.bf16 %v615_v36, %v613_v34 }
 0x16d   : > { %1045 = vmatprep.subr.bf16.mxu0 %v1044_v37 }
 0x1f8   : > { %v464_v39 = vpop.xlane.xlu0 %463 }
 0x1f9   : > { %v472_v41 = vadd.f32 %v907_v38, %v464_v39  ;;  %v612_v38 = vld [vmem:[#allocation8 + $0xe0] sm:$0xff]  ;;  %v614_v39 = vld [vmem:[#allocation8 + $0xf0] sm:$0xff] }
 0x23c   : > { %v555_v40 = vpop.f32.mrb[0].mxu1 }
 0x23d   : > { %v559_v42 = vmul.f32 2.0, %v555_v40  ;;  %v985_v43 = vpop.f32.mrb[1].mxu1  ;;  %v1046_v40 = vpack.c.bf16 %v614_v39, %v612_v38 }
 0x23f   : > { %v560_v44 = vsub.f32 %v472_v41, %v559_v42  ;;  %1047 = vmatpush1.bf16.msra.mxu0 %v1046_v40 }
 0x241   : > { %561 = vmin.xlane.f32.xlu0 %v560_v44 }
 0x2ce   : > { %v562_v47 = vpop.xlane.xlu0 %561 }
 0x2cf   : > { %vm565_vm2 = vcmp.le.f32.partialorder %v560_v44, %v562_v47 }
 0x2d0   : > { %v566_v48 = vsel %vm565_vm2, %v1647_v46, 128 }
 0x2d1   : > { %v568_v49 = vshra.s32 %v566_v48, 16  ;;  %v567_v30 = vand.u32 65535, %v566_v48  ;;  %v1373_v48 = vmov 1.0  }
 0x2d3   : > { %v1650_v50 = vcvt.s32.f32 %v568_v49  ;;  %v569_v32 = vcvt.s32.f32 %v567_v30  ;;  %v1659_v49 = vshrl.u32 %v563_v45, 7 }
 0x2d5   : > { %571 = vmin.xlane.f32.xlu1 %v1650_v50 }
 0x362   : > { %v572_v31 = vpop.xlane.xlu1 %571 }
 0x363   : > { %vm573_vm3 = vcmp.eq.f32.partialorder %v1650_v50, %v572_v31  ;;  %v578_v41 = vcvt.f32.s32 %v572_v31  ;;  %v699_v50 = vstv %s911_s26 }
 0x364   : > { %v574_v33 = vsel %vm573_vm3, %v569_v32, inf  ;;  %v700_v51 = vadd.s32 %v699_v50, %v1659_v49 }
 0x365   : > { %575 = vmin.xlane.f32.xlu1 %v574_v33  ;;  %v579_v43 = vshll.u32 %v578_v41, 16 }
 0x366   : > { %vm701_vm5 = vcmp.lt.s32.totalorder %v700_v51, 16 }
 0x3f2   : > { %v576_v42 = vpop.xlane.xlu1 %575 }
 0x3f3   : > { %v577_v44 = vcvt.f32.s32 %v576_v42 }
 0x3f5   : > { %v580_v47 = vadd.s32 %v579_v43, %v577_v44 }
 0x3f7   : > { %vm581_vm4 = vcmp.eq.s32.totalorder %v1647_v46, %v580_v47 }
 0x3f8   : > { %909 = vmatmul.mubr.msk.f32.vlgmr.msra.gmra.mrb[2].mxu0 %vm581_vm4, %v1373_v48 }
 0x4cb   : > { %v682_v53 = vpop.f32.mrb[2].mxu0 }
 0x4cc   : > { %v703_v54 = vsub.f32 %v682_v53, %v1638_v35  ;;  %v684_v55 = vpop.f32.mrb[3].mxu0 }
 0x4cd   : > { %v694_v56 = vadd.f32 %v910_v52, %v684_v55 }
 0x4ce   : > { %v704_v57 = vsel %vm701_vm5, %v703_v54, 0.0 }
 0x4cf   : > { %695 = vst [vmem:[%s368_s16] sm:$0xff] %v694_v56  ;;  %v711_v45 = vmul.f32 %v704_v57, %v704_v57 }
 0x4d1   : > { %712 = vadd.xlane.f32.xlu0 %v711_v45 }
 0x4d2   : > { %1267 = shalt.err (!%p1264_p4)
}
 0x4d3   : > { %s1268_s26 = scalar_lea.hbm %s1673_s20, 128  ;;  %s1272_s16 = scalar_lea.hbm %s1755_s7, 256 }
 0x4d4   : > { %p1269_p0 = scmp.ne.s32.totalorder %s1673_s20, %s1268_s26  ;;  %p1273_p8 = scmp.lt.u32.totalorder %s1673_s20, %s1755_s7 }
 0x4d5   : > { %p1274_p13 = scmp.lt.u32.totalorder %s1272_s16, %s1268_s26  ;;  %p1276_p10 = scmp.lt.u32.totalorder %s1268_s26, %s1673_s20 }
 0x4d6   : > { %p1270_p9 = pnand %p1269_p0, %p1566_p5 }
 0x4d7   : > { %p1275_p6 = por %p1274_p13, %p1273_p8 }
 0x4d8   : > { %p1271_p11 = pneg %p1270_p9 }
 0x4d9   : > { %p1277_p3 = por %p1276_p10, %p1275_p6 }
 0x4db   : > { %p1278_p7 = pnand %p1277_p3, %p1271_p11 }
 0x4dd   : > { %1281 = shalt.err (!%p1278_p7)
}
 0x4de   : > { %1064 = dma.vmem_to_hbm [thread:$0]  (%p1566_p5), %s747_s15, 128, %s1673_s20, %s728_s11   ;;  %v908_v0 = vsel %vm581_vm4, 1.0, %v1372_v1  ;;  %vm722_vm6 = vcmp.eq.s32.totalorder %v1647_v46, 0  ;;  %vm721_vm7 = vcmp.eq.s32.totalorder %v1659_v49, 0 }
 0x4df   : > { %v702_v2 = vsel %vm701_vm5, %v908_v0, 0.0  ;;  %s904_s15 = sshll.u32 %s1611_s21, 1  ;;  %s915_s25 = sshll.u32 %s1442_s9, 5 }
 0x4e0   : > { %v705_v3 = vrot.slane %v702_v2, 4  ;;  %s375_s20 = scalar_lea.vmem [#allocation11], %s904_s15  ;;  %s1704_s22 = scalar_lea.hbm %s1756_s8, %s915_s25 }
 0x4e1   : > { %s759_s11 = sshll.u32 %s375_s20, 4  ;;  %s733_s9 = scalar_lea.sflag [#allocation12], %s1611_s21  ;;  %s1706_s11 = int_to_ptr.vmem [resolvable:$true] %s759_s11 }
 0x4e2   : > { %v706_v4 = vadd.f32 %v705_v3, %v702_v2  ;;  %s1282_s26 = scalar_lea.vmem %s1706_s11, 32  ;;  %s1375_s19 = smov [#allocation11]  }
 0x4e3   : > { %p1283_p12 = scmp.ne.s32.totalorder %s1706_s11, %s1282_s26  ;;  %s1286_s10 = sshll.u32 %s1375_s19, 4  ;;  %s1287_s10 = int_to_ptr.vmem [resolvable:$false] %s1286_s10 }
 0x4e4   : > { %v707_v5 = vrot.slane %v706_v4, 2  ;;  %s1288_s16 = scalar_lea.vmem %s1287_s10, 64  ;;  %p1289_p4 = scmp.lt.s32.totalorder %s1706_s11, %s1287_s10 }
 0x4e5   : > { %p1284_p2 = pnand %p1283_p12, %p1566_p5  ;;  %p1290_p0 = scmp.lt.s32.totalorder %s1288_s16, %s1282_s26 }
 0x4e6   : > { %v708_v6 = vadd.f32 %v707_v5, %v706_v4 }
 0x4e7   : > { %p1285_p1 = pneg %p1284_p2  ;;  %p1291_p9 = por %p1290_p0, %p1289_p4 }
 0x4e8   : > { %v709_v7 = vrot.slane %v708_v6, 1 }
 0x4e9   : > { %p1292_p11 = pnand %p1291_p9, %p1285_p1 }
 0x4ea   : > { %v710_v8 = vadd.f32 %v709_v7, %v708_v6 }
 0x55e   : > { %v713_v35 = vpop.xlane.xlu0 %712 }
 0x55f   : > { %v714_v58 = vrot.slane %v713_v35, 4 }
 0x561   : > { %v715_v59 = vadd.f32 %v714_v58, %v713_v35 }
 0x563   : > { %v716_v60 = vrot.slane %v715_v59, 2 }
 0x565   : > { %v717_v61 = vadd.f32 %v716_v60, %v715_v59 }
 0x567   : > { %v718_v62 = vrot.slane %v717_v61, 1 }
 0x569   : > { %v719_v63 = vadd.f32 %v718_v62, %v717_v61 }
 0x56b   : > { %1048 = vpush %v719_v63 }
 0x59c   : > { %s1049_s13 = spop %1048 }
 0x59d   : > { %v723_v1 = vstv %s1049_s13 }
 0x59e   : > { %v724_v9 = vsel %vm722_vm6, %v723_v1, 0.0 }
 0x59f   : > { %v725_v46 = vsel %vm721_vm7, %v710_v8, %v724_v9 }
 0x5a0   : > { %726 = vst [vmem:[%s375_s20] sm:$0x3] %v725_v46 }
 0x5a1   : > { %1295 = shalt.err (!%p1292_p11)
}
 0x5a2   : > { %s1296_s21 = scalar_lea.hbm %s1704_s22, 32  ;;  %s1300_s15 = scalar_lea.hbm %s1756_s8, 64 }
 0x5a3   : > { %p1297_p8 = scmp.ne.s32.totalorder %s1704_s22, %s1296_s21  ;;  %p1301_p10 = scmp.lt.u32.totalorder %s1704_s22, %s1756_s8 }
 0x5a4   : > { %p1302_p3 = scmp.lt.u32.totalorder %s1300_s15, %s1296_s21  ;;  %p1304_p12 = scmp.lt.u32.totalorder %s1296_s21, %s1704_s22 }
 0x5a5   : > { %p1298_p13 = pnand %p1297_p8, %p1566_p5 }
 0x5a6   : > { %p1303_p7 = por %p1302_p3, %p1301_p10 }
 0x5a7   : > { %p1299_p6 = pneg %p1298_p13 }
 0x5a8   : > { %p1305_p2 = por %p1304_p12, %p1303_p7 }
 0x5aa   : > { %p1306_p1 = pnand %p1305_p2, %p1299_p6 }
 0x5ac   : > { %1309 = shalt.err (!%p1306_p1)
}
 0x5ad   : > { %1065 = dma.vmem_to_hbm [thread:$0]  (%p1566_p5), %s1706_s11, 32, %s1704_s22, %s733_s9  }
 0x5ae PF: > { %s1778_s13 = sld [smem:[#allocation18_spill]]  ;;  %s1779_s17 = sld [smem:[#allocation19_spill]] }
 0x5af   : > { %p1781_p0 = scmp.ge.s32.totalorder %s1360_s30, 2 }
 0x5b4   : > { %s771_s18 = sand.u32 1, %s1778_s13   ;;  %p1780_p4 = scmp.ne.s32.totalorder %s1779_s17, 0 }
 0x5b5   : > { %s772_s26 = scalar_lea.sflag [#allocation4], %s771_s18 }
 0x5b6   : > { %p1083_p9 = pnand %p1781_p0, %p1780_p4 }
 0x5b8   : > { %1339 = dma.done.wait (!%p1083_p9), %s772_s26, 128  }
 0x5b9   : > { %1341 = vsyncadd (!%p1083_p9), %s772_s26, 4294967168  ;;  %s781_s19 = scalar_lea.sflag [#allocation12], %s771_s18 }
 0x5ba   : > { %1343 = dma.done.wait (!%p1083_p9), %s781_s19, 32  }
 0x5bb   : > { %1345 = vsyncadd (!%p1083_p9), %s781_s19, 4294967264  ;;  %s1782_s24 = smov %s1552_s27  ;;  %p27_p5 = scmp.ge.s32.totalorder %s1552_s27, 4  }
 0x5bc   : > { %s1783_s27 = smov %s1352_s28  ;;  %s1784_s28 = smov %s1356_s29 }
 0x5bd   : > { %s1785_s29 = smov %s1562_s23  ;;  %s1786_s30 = smov %s1782_s24 }
 0x5be   :  { %29 = sbr.rel (!%p27_p5) target bundleno = 9 (0x9), region = 122 }
 0x5c5   :  { %786 = vsyncpa [#allocation3], 1 }
 0x5c6   :  { %788 = vsyncpa [#allocation3 + $0x1], 1 }
 0x5c7   :  { %789 = vsyncpa [#allocation6], 1 }
 0x5c8   :  { %790 = vsyncpa [#allocation9], 1 }
 0x5c9   :  { %791 = vsyncpa [#allocation4], 1 }
 0x5ca   :  { %793 = vsyncpa [#allocation4 + $0x1], 1 }
 0x5cb   :  { %794 = vsyncpa [#allocation12], 1 }
 0x5cc   :  { %796 = vsyncpa [#allocation12 + $0x1], 1 }

</bundles_post_ra>
